<compile_context>
chip_gen: v6e
topology: v6e:2x2x1
jax: 0.10.0
libtpu: 0.0.40
codegen_flags: <defaults>
</compile_context>

<pallas_src>
import functools

import jax
import jax.numpy as jnp
from jax import lax
from jax.experimental import pallas as pl
from jax.experimental.pallas import tpu as pltpu


def _round_up(n, m):
    return ((n + m - 1) // m) * m


def _rbf_kernel(x_ref, p_ref, psq_ref, w_ref, o_ref, *,
                neg_inv_two_sigma_sq, use_bf16_matmul):
    x = x_ref[...]                                              # [TB, F] f32
    p = p_ref[...]                                              # [H,  F] f32 (resident)

    # ||x||^2 per row, laid out along lanes: [1, TB] (small relayout, hidden).
    x_sq = jnp.sum(x * x, axis=-1)[None, :]                     # [1, TB]

    # Cross term p @ x^T on the MXU -> [H, TB] (lane-dense: TB % 128 == 0).
    if use_bf16_matmul:
        xm, pm = x.astype(jnp.bfloat16), p.astype(jnp.bfloat16)
    else:
        xm, pm = x, p
    px = lax.dot_general(pm, xm, (((1,), (1,)), ((), ())),
                         preferred_element_type=jnp.float32)    # [H, TB]

    # Squared pairwise distance; clamp tiny negatives from cancellation.
    sq_dist = jnp.maximum(psq_ref[...] + x_sq - 2.0 * px, 0.0)  # [H, TB]

    # Gaussian RBF kernel (EUP exp); scale folded into one precomputed constant.
    k = jnp.exp(sq_dist * neg_inv_two_sigma_sq)                 # [H, TB]

    # Linear(H, 1, bias=False): VPU multiply (w is [H,1], broadcasts over lanes)
    # + sublane reduce -> already lane-dense [1, TB].
    o_ref[...] = jnp.sum(k * w_ref[...], axis=0, keepdims=True).astype(o_ref.dtype)


def _pick_tile_b(B, F, H, vmem_cap_bytes, requested):
    """Choose a lane-dense batch tile respecting VMEM and megacore pipelining."""
    b_pad128 = _round_up(max(B, 1), 128)

    if requested is None:
        # Target roughly 2 MiB of x per tile (amortizes ~0.35 us per-grid-step overhead).
        tile_b = (2 << 20) // (4 * F)
        tile_b = max(512, min(tile_b, 8192))
    else:
        tile_b = int(requested)

    # VMEM budget: double-buffered x tile + ~4 live f32 [H, TILE_B] intermediates
    # + double-buffered output, after subtracting the resident prototype-side arrays.
    resident = 4 * (2 * (H * F) + 4 * H)
    budget = int(0.60 * vmem_cap_bytes) - resident
    per_row = 4 * (2 * F + 4 * H + 2)
    tile_b = min(tile_b, max(128, budget // max(per_row, 1)))

    # Keep >= 4 grid steps for large batches (>= 2 per v7x TensorCore) so the
    # pipeline can hide the HBM fetch of the next x tile on each core.
    if b_pad128 >= 4 * 128:
        tile_b = min(tile_b, max(128, (b_pad128 // 4) // 128 * 128))

    tile_b = _round_up(max(128, min(tile_b, b_pad128)), 128)
    return tile_b


def rbf_forward(x, prototypes, linear_w, sigma, *, tile_b=None,
                use_bf16_matmul=False):
    """x: [B, F], prototypes: [H, F], linear_w: [1, H] (PyTorch Linear layout).

    use_bf16_matmul=True uses bf16 MXU operands (f32 accumulate) -- faster on
    v6e/v7x for large H/F, but perturbs sq_dist by ~1e-2 relative (fine for an
    RBF layer, too loose for the 1e-5 reference check).
    """
    B, F = x.shape
    H, Fp = prototypes.shape
    assert F == Fp, "feature dims must match"
    assert linear_w.shape == (1, H)

    x = x.astype(jnp.float32)
    prototypes = prototypes.astype(jnp.float32)
    linear_w = linear_w.astype(jnp.float32)

    # Real VMEM capacity (v7x: 64 MiB/TC, v5e/v6e: 128 MiB); fall back if unavailable.
    try:
        vmem_cap = int(pltpu.get_tpu_info().vmem_capacity_bytes)
    except Exception:  # pragma: no cover - off-TPU / API unavailable
        vmem_cap = 128 * 1024 * 1024

    tile_b = _pick_tile_b(B, F, H, vmem_cap, tile_b)
    b_pad = _round_up(B, tile_b)
    if b_pad != B:
        x = jnp.pad(x, ((0, b_pad - B), (0, 0)))

    # Hoisted prototype-side constants, in [H, 1] column layout (broadcast over lanes).
    p_sq = jnp.sum(prototypes * prototypes, axis=-1)[:, None]   # [H, 1]
    w_col = linear_w.T                                          # [H, 1]
    neg_inv_two_sigma_sq = -1.0 / (2.0 * float(sigma) * float(sigma))

    grid = (b_pad // tile_b,)

    # Explicit VMEM limit scaled to the tile (v5e default scoped VMEM is only 16 MiB).
    vmem_need = 4 * (2 * tile_b * F + 2 * H * F + 4 * H
                     + 2 * tile_b + 4 * tile_b * H)
    vmem_limit = int(min(max(2 * vmem_need, 32 * 1024 * 1024),
                         int(0.75 * vmem_cap)))
    vmem_limit = max(vmem_limit, vmem_need + (4 << 20))

    cost = pl.CostEstimate(
        flops=int(2 * b_pad * H * F + 2 * b_pad * F + 5 * b_pad * H),
        transcendentals=int(b_pad * H),
        bytes_accessed=int(4 * (b_pad * F + H * F + 2 * H + b_pad)),
    )

    kernel = functools.partial(
        _rbf_kernel,
        neg_inv_two_sigma_sq=neg_inv_two_sigma_sq,
        use_bf16_matmul=use_bf16_matmul,
    )
    out_t = pl.pallas_call(
        kernel,
        out_shape=jax.ShapeDtypeStruct((1, b_pad), jnp.float32),
        grid=grid,
        in_specs=[
            pl.BlockSpec((tile_b, F), lambda i: (i, 0)),   # x: tiled over batch
            pl.BlockSpec((H, F), lambda i: (0, 0)),        # prototypes: resident
            pl.BlockSpec((H, 1), lambda i: (0, 0)),        # ||p||^2 column: resident
            pl.BlockSpec((H, 1), lambda i: (0, 0)),        # linear weight column: resident
        ],
        out_specs=pl.BlockSpec((1, tile_b), lambda i: (0, i)),  # lane-dense output
        compiler_params=pltpu.CompilerParams(
            dimension_semantics=("parallel",),
            vmem_limit_bytes=vmem_limit,
        ),
        cost_estimate=cost,
    )(x, prototypes, p_sq, w_col)

    # TODO(synk): Kernel_Layer.reset_parameters / _k_means is host-side init
    # (NumPy k-means), not part of the forward pass; prototypes are taken as input.
    return out_t[0, :B][:, None]                               # [B, 1]


def _reference(x, prototypes, linear_w, sigma):
    # Pure-JAX reference mirroring the PyTorch broadcast formulation.
    diff = x[:, None, :] - prototypes[None, :, :]
    k = jnp.exp(-jnp.sum(diff * diff, axis=-1) / (2.0 * sigma * sigma))
    return k @ linear_w.T


if __name__ == "__main__":
    sigma = 1.5
    key = jax.random.PRNGKey(0)
    kx, kp, kw, kx2 = jax.random.split(key, 4)

    # Small shapes consistent with the module's forward: x is [batch, n_features].
    batch, n_features, hidden_dim = 8, 32, 16
    x = jax.random.normal(kx, (batch, n_features), dtype=jnp.float32)
    # Prototypes: deterministic stand-ins for k-means centroids of training data.
    prototypes = jax.random.normal(kp, (hidden_dim, n_features), dtype=jnp.float32)
    # Linear(hidden_dim, 1, bias=False) weight, PyTorch layout [out, in] = [1, H].
    bound = 1.0 / (hidden_dim ** 0.5)
    linear_w = jax.random.uniform(
        kw, (1, hidden_dim), minval=-bound, maxval=bound, dtype=jnp.float32
    )

    out = jax.block_until_ready(rbf_forward(x, prototypes, linear_w, sigma))
    ref = _reference(x, prototypes, linear_w, sigma)
    assert out.shape == (batch, 1)
    assert jnp.allclose(out, ref, atol=1e-5, rtol=1e-5), "mismatch vs reference (small)"

    # Second check: batch not a multiple of the tile, multi-step grid (padding path).
    batch2 = 300
    x2 = jax.random.normal(kx2, (batch2, n_features), dtype=jnp.float32)
    out2 = jax.block_until_ready(
        rbf_forward(x2, prototypes, linear_w, sigma, tile_b=128)
    )
    ref2 = _reference(x2, prototypes, linear_w, sigma)
    assert out2.shape == (batch2, 1)
    assert jnp.allclose(out2, ref2, atol=1e-5, rtol=1e-5), "mismatch vs reference (tiled)"

    print("KERNEL_OK")
</pallas_src>

<mosaic_0001>
module attributes {stable_mosaic.version = 11 : i64} {
  func.func @_rbf_kernel(%arg0: i32, %arg1: memref<128x32xf32, #tpu.memory_space<vmem>>, %arg2: memref<16x32xf32, #tpu.memory_space<vmem>>, %arg3: memref<16x1xf32, #tpu.memory_space<vmem>>, %arg4: memref<16x1xf32, #tpu.memory_space<vmem>>, %arg5: memref<1x128xf32, #tpu.memory_space<vmem>>) attributes {dimension_semantics = [#tpu.dimension_semantics<parallel>], iteration_bounds = array<i64: 1>, scalar_prefetch = 0 : i64, scratch_operands = 0 : i64, tpu.core_type = #tpu.core_type<tc>, window_params = [{transform_indices = @transform_0, window_bounds = array<i64: 128, 32>}, {pipeline_mode = #tpu.pipeline_mode<synchronous>, transform_indices = @transform_1, window_bounds = array<i64: 16, 32>}, {pipeline_mode = #tpu.pipeline_mode<synchronous>, transform_indices = @transform_2, window_bounds = array<i64: 16, 1>}, {pipeline_mode = #tpu.pipeline_mode<synchronous>, transform_indices = @transform_3, window_bounds = array<i64: 16, 1>}, {transform_indices = @transform_4, window_bounds = array<i64: 1, 128>}]} {
    %c0 = arith.constant 0 : index
    %c0_0 = arith.constant 0 : index
    %0 = vector.load %arg1[%c0, %c0_0] : memref<128x32xf32, #tpu.memory_space<vmem>>, vector<128x32xf32>
    %c0_1 = arith.constant 0 : index
    %c0_2 = arith.constant 0 : index
    %1 = vector.load %arg2[%c0_1, %c0_2] : memref<16x32xf32, #tpu.memory_space<vmem>>, vector<16x32xf32>
    %2 = arith.mulf %0, %0 : vector<128x32xf32>
    %cst = arith.constant dense<0.000000e+00> : vector<128xf32>
    %3 = vector.multi_reduction <add>, %2, %cst [1] : vector<128x32xf32> to vector<128xf32>
    %4 = vector.shape_cast %3 : vector<128xf32> to vector<1x128xf32>
    %cst_3 = arith.constant dense<0.000000e+00> : vector<16x128xf32>
    %5 = tpu.matmul %1, %0, %cst_3 {dimension_numbers = #tpu.dot_dimension_numbers<[1], [1], [0], [0], [0, 0, 1, 0], [], []>} : vector<16x32xf32>, vector<128x32xf32>, vector<16x128xf32> -> vector<16x128xf32>
    %c0_4 = arith.constant 0 : index
    %c0_5 = arith.constant 0 : index
    %6 = vector.load %arg3[%c0_4, %c0_5] : memref<16x1xf32, #tpu.memory_space<vmem>>, vector<16x1xf32>
    %7 = vector.broadcast %6 : vector<16x1xf32> to vector<16x128xf32>
    %8 = vector.broadcast %4 : vector<1x128xf32> to vector<16x128xf32>
    %9 = arith.addf %7, %8 : vector<16x128xf32>
    %cst_6 = arith.constant 2.000000e+00 : f32
    %10 = vector.broadcast %cst_6 : f32 to vector<16x128xf32>
    %11 = arith.mulf %10, %5 : vector<16x128xf32>
    %12 = arith.subf %9, %11 : vector<16x128xf32>
    %cst_7 = arith.constant 0.000000e+00 : f32
    %13 = vector.broadcast %cst_7 : f32 to vector<16x128xf32>
    %14 = arith.maximumf %12, %13 : vector<16x128xf32>
    %cst_8 = arith.constant -0.222222224 : f32
    %15 = vector.broadcast %cst_8 : f32 to vector<16x128xf32>
    %16 = arith.mulf %14, %15 : vector<16x128xf32>
    %17 = math.exp %16 : vector<16x128xf32>
    %c0_9 = arith.constant 0 : index
    %c0_10 = arith.constant 0 : index
    %18 = vector.load %arg4[%c0_9, %c0_10] : memref<16x1xf32, #tpu.memory_space<vmem>>, vector<16x1xf32>
    %19 = vector.broadcast %18 : vector<16x1xf32> to vector<16x128xf32>
    %20 = arith.mulf %17, %19 : vector<16x128xf32>
    %cst_11 = arith.constant dense<0.000000e+00> : vector<128xf32>
    %21 = vector.multi_reduction <add>, %20, %cst_11 [0] : vector<16x128xf32> to vector<128xf32>
    %22 = vector.shape_cast %21 : vector<128xf32> to vector<1x128xf32>
    %c0_12 = arith.constant 0 : index
    %c0_13 = arith.constant 0 : index
    %23 = vector.load %arg5[%c0_12, %c0_13] : memref<1x128xf32, #tpu.memory_space<vmem>>, vector<1x128xf32>
    tpu.vector_store %arg5[%c0_12, %c0_13], %22 {strides = array<i32>} : memref<1x128xf32, #tpu.memory_space<vmem>>, vector<1x128xf32>,
    return
  }
  func.func @transform_0(%arg0: i32) -> (i32, i32) {
    %c0_i32 = arith.constant 0 : i32
    %c0_i32_0 = arith.constant 0 : i32
    return %arg0, %c0_i32 : i32, i32
  }
  func.func @transform_1(%arg0: i32) -> (i32, i32) {
    %c0_i32 = arith.constant 0 : i32
    %c0_i32_0 = arith.constant 0 : i32
    %c0_i32_1 = arith.constant 0 : i32
    return %c0_i32, %c0_i32_0 : i32, i32
  }
  func.func @transform_2(%arg0: i32) -> (i32, i32) {
    %c0_i32 = arith.constant 0 : i32
    %c0_i32_0 = arith.constant 0 : i32
    %c0_i32_1 = arith.constant 0 : i32
    return %c0_i32, %c0_i32_0 : i32, i32
  }
  func.func @transform_3(%arg0: i32) -> (i32, i32) {
    %c0_i32 = arith.constant 0 : i32
    %c0_i32_0 = arith.constant 0 : i32
    %c0_i32_1 = arith.constant 0 : i32
    return %c0_i32, %c0_i32_0 : i32, i32
  }
  func.func @transform_4(%arg0: i32) -> (i32, i32) {
    %c0_i32 = arith.constant 0 : i32
    %c0_i32_0 = arith.constant 0 : i32
    return %c0_i32, %arg0 : i32, i32
  }
}

</mosaic_0001>

<bundles_post_ra>
// kernel: tpu_custom_call.1
= control target key start
LH: loop header
LB: loop body
LE: loop exit
PB: predicated region body
PF: predicated region fallthrough
CT: control target
= control target key end

     0   :  { %vm52_vm0 = vcmask 261120   ;;  %v533_v2 = vmov 0   ;;  %s763_s0 = inlined_call_operand.vmem [shape: f32[128,32], index: 0, kind: input, shape index: {}]   ;;  %s764_s1 = inlined_call_operand.vmem [shape: f32[16,32], index: 1, kind: input, shape index: {}]   ;;  %s765_s2 = inlined_call_operand.vmem [shape: f32[16,1], index: 2, kind: input, shape index: {}]   ;;  %s766_s3 = inlined_call_operand.vmem [shape: f32[16,1], index: 3, kind: input, shape index: {}]   ;;  %s767_s4 = inlined_call_operand.hbm [shape: f32[1,128], index: 4, kind: output, shape index: {}]  }
   0x1   :  { %v563_v0 = vld [vmem:[%s763_s0 + $0x78] sm:$0xff]  ;;  %v568_v1 = vld [vmem:[%s763_s0 + $0x70] sm:$0xff]  ;;  %506 = vset.pattern.permute.xlu1 %v533_v2  ;;  %505 = vset.pattern.permute.xlu0 %v533_v2  ;;  %v31_v3 = vld [vmem:[%s763_s0 + $0x68] sm:$0xff] }
   0x2   :  { %468 = vmatprep.subr.msk.mxu0 %vm52_vm0, %v563_v0  ;;  %v582_v4 = vld [vmem:[%s763_s0 + $0x18] sm:$0xff]  ;;  %v587_v5 = vld [vmem:[%s763_s0 + $0x10] sm:$0xff]  ;;  %v592_v6 = vld [vmem:[%s763_s0 + $0x8] sm:$0xff] }
   0x3   :  { %469 = vmatpush3.xpose.msk.msra.mxu0 %vm52_vm0, %v563_v0  ;;  %v597_v7 = vld [vmem:[%s763_s0] sm:$0xff]  ;;  %v38_v9 = vmul.f32 %v587_v5, %v587_v5  ;;  %v39_v10 = vmul.f32 %v582_v4, %v582_v4  ;;  %v37_v12 = vmul.f32 %v592_v6, %v592_v6  ;;  %v621_v15 = vld [vmem:[%s763_s0 + $0x28] sm:$0xff] }
   0x4   :  { %470 = vmatprep.subr.msk.mxu0 %vm52_vm0, %v568_v1  ;;  %v34_v8 = vld [vmem:[%s764_s1] sm:$0xff]  ;;  %v36_v11 = vmul.f32 %v597_v7, %v597_v7 }
   0x5   :  { %500 = vmatprep.mubr.msk.f32.mxu0 %vm52_vm0, %v34_v8  ;;  %v59_v13 = vsel %vm52_vm0, %v38_v9, 0.0  ;;  %v30_v14 = vld [vmem:[%s763_s0 + $0x60] sm:$0xff] }
   0x6   :  { %v53_v16 = vsel %vm52_vm0, %v36_v11, 0.0  ;;  %60 = vadd.xlane.f32.xlu1 %v59_v13 }
   0x7   :  { %471 = vmatpush3.xpose.msk.msra.mxu0 %vm52_vm0, %v568_v1 }
   0x8   :  { %472 = vmatprep.subr.msk.mxu0 %vm52_vm0, %v31_v3 }
   0x9   :  { %9 = vsyncpa [#allocation3], 0  ;;  %v627_v17 = vld [vmem:[%s763_s0 + $0x20] sm:$0xff]  ;;  %54 = vadd.xlane.f32.xlu0 %v53_v16  ;;  %v62_v18 = vsel %vm52_vm0, %v39_v10, 0.0  ;;  %v41_v19 = vmul.f32 %v621_v15, %v621_v15  ;;  %v56_v20 = vsel %vm52_vm0, %v37_v12, 0.0  ;;  %v29_v22 = vld [vmem:[%s763_s0 + $0x58] sm:$0xff]  ;;  %v49_v41 = vmul.f32 %v31_v3, %v31_v3 }
   0xa   :  { %v40_v21 = vmul.f32 %v627_v17, %v627_v17  ;;  %v25_v23 = vld [vmem:[%s763_s0 + $0x38] sm:$0xff]  ;;  %63 = vadd.xlane.f32.xlu1 %v62_v18  ;;  %v24_v24 = vld [vmem:[%s763_s0 + $0x30] sm:$0xff]  ;;  %v27_v30 = vld [vmem:[%s763_s0 + $0x48] sm:$0xff]  ;;  %v47_v37 = vmul.f32 %v29_v22, %v29_v22  ;;  %v48_v43 = vmul.f32 %v30_v14, %v30_v14  ;;  %v51_v45 = vmul.f32 %v563_v0, %v563_v0 }
   0xb   :  { %473 = vmatpush3.xpose.msk.msra.mxu0 %vm52_vm0, %v31_v3  ;;  %v68_v25 = vsel %vm52_vm0, %v41_v19, 0.0  ;;  %v43_v26 = vmul.f32 %v25_v23, %v25_v23  ;;  %v42_v28 = vmul.f32 %v24_v24, %v24_v24  ;;  %v28_v29 = vld [vmem:[%s763_s0 + $0x50] sm:$0xff]  ;;  %v26_v31 = vld [vmem:[%s763_s0 + $0x40] sm:$0xff]  ;;  %v45_v33 = vmul.f32 %v27_v30, %v27_v30  ;;  %v231_v50 = vld [vmem:[%s765_s2 + $0x8] sm:$0xff] }
   0xc   :  { %474 = vmatprep.subr.msk.mxu0 %vm52_vm0, %v30_v14  ;;  %v65_v27 = vsel %vm52_vm0, %v40_v21, 0.0  ;;  %v44_v35 = vmul.f32 %v26_v31, %v26_v31  ;;  %v46_v39 = vmul.f32 %v28_v29, %v28_v29  ;;  %v86_v40 = vsel %vm52_vm0, %v47_v37, 0.0  ;;  %v396_v51 = vld [vmem:[%s766_s3] sm:$0xff]  ;;  %v397_v53 = vld [vmem:[%s766_s3 + $0x8] sm:$0xff] }
   0xd   :  { %57 = vadd.xlane.f32.xlu0 %v56_v20  ;;  %v74_v32 = vsel %vm52_vm0, %v43_v26, 0.0  ;;  %v71_v34 = vsel %vm52_vm0, %v42_v28, 0.0  ;;  %v80_v36 = vsel %vm52_vm0, %v45_v33, 0.0  ;;  %v92_v44 = vsel %vm52_vm0, %v49_v41, 0.0  ;;  %v230_v52 = vld [vmem:[%s765_s2] sm:$0xff]  ;;  %v35_v54 = vld [vmem:[%s764_s1 + $0x8] sm:$0xff] }
   0xe   :  { %69 = vadd.xlane.f32.xlu1 %v68_v25  ;;  %v77_v38 = vsel %vm52_vm0, %v44_v35, 0.0  ;;  %v83_v42 = vsel %vm52_vm0, %v46_v39, 0.0  ;;  %v89_v46 = vsel %vm52_vm0, %v48_v43, 0.0  ;;  %v50_v47 = vmul.f32 %v568_v1, %v568_v1  ;;  %s534_s1 = smov [#allocation2]  }
   0xf   :  { %475 = vmatpush3.xpose.msk.msra.mxu0 %vm52_vm0, %v30_v14  ;;  %v98_v48 = vsel %vm52_vm0, %v51_v45, 0.0  ;;  %v258_v55 = vlaneseq  ;;  %vm269_vm1 = vcmask 130112   ;;  %vm276_vm2 = vcmask 195712   ;;  %s424_s2 = sshll.u32 %s534_s1, 4  ;;  %s425_s2 = int_to_ptr.vmem [resolvable:$true] %s424_s2 }
  0x10   :  { %476 = vmatprep.subr.msk.mxu0 %vm52_vm0, %v29_v22  ;;  %v95_v49 = vsel %vm52_vm0, %v50_v47, 0.0  ;;  %vm283_vm3 = vcmask 261312   ;;  %vm290_vm4 = vcmask 326912   ;;  %vm297_vm5 = vcmask 392512   ;;  %s511_s3 = scalar_lea.vmem %s425_s2, 16  ;;  %s515_s6 = scalar_lea.vmem %s425_s2, 32 }
  0x11   :  { %66 = vadd.xlane.f32.xlu0 %v65_v27  ;;  %v724_v56 = vand.u32 127, %v258_v55  ;;  %v726_v57 = vshrl.u32 %v258_v55, 7  ;;  %vm304_vm6 = vcmask 458112   ;;  %vm311_vm7 = vcmask 523712   ;;  %p512_p0 = scmp.ne.s32.totalorder %s425_s2, %s511_s3  ;;  %p516_p1 = scmp.lt.s32.totalorder %s425_s2, %s425_s2 }
  0x12   :  { %75 = vadd.xlane.f32.xlu1 %v74_v32  ;;  %vm318_vm8 = vcmask 589312   ;;  %vm325_vm9 = vcmask 654912   ;;  %vm332_vm10 = vcmask 720512   ;;  %vm339_vm11 = vcmask 786112   ;;  %p517_p2 = scmp.lt.s32.totalorder %s515_s6, %s511_s3 }
  0x13   :  { %477 = vmatpush3.xpose.msk.msra.mxu0 %vm52_vm0, %v29_v22  ;;  %v264_v58 = vadd.s32 4294967288, %v724_v56  ;;  %v271_v60 = vadd.s32 4294967280, %v724_v56  ;;  %v262_v61 = vsub.s32 %v724_v56, %v726_v57  ;;  %v278_v0 = vadd.s32 4294967272, %v724_v56 }
  0x14   :  { %478 = vmatprep.subr.msk.mxu0 %vm52_vm0, %v28_v29  ;;  %v292_v10 = vadd.s32 4294967256, %v724_v56  ;;  %v306_v20 = vadd.s32 4294967240, %v724_v56  ;;  %v313_v25 = vadd.s32 4294967232, %v724_v56  ;;  %v327_v35 = vadd.s32 4294967216, %v724_v56  ;;  %p518_p3 = por %p517_p2, %p516_p1 }
  0x15   :  { %72 = vadd.xlane.f32.xlu0 %v71_v34  ;;  %v267_v62 = vsub.s32 %v264_v58, %v726_v57  ;;  %v274_v1 = vsub.s32 %v271_v60, %v726_v57  ;;  %v341_v45 = vadd.s32 4294967200, %v724_v56  ;;  %v355_v55 = vadd.s32 4294967184, %v724_v56 }
  0x16   :  { %81 = vadd.xlane.f32.xlu1 %v80_v36  ;;  %v295_v16 = vsub.s32 %v292_v10, %v726_v57  ;;  %v309_v26 = vsub.s32 %v306_v20, %v726_v57  ;;  %v330_v41 = vsub.s32 %v327_v35, %v726_v57  ;;  %vm346_vm12 = vcmask 851712   ;;  %p519_p4 = pnand %p518_p3, %p512_p0 }
  0x17   :  { %479 = vmatpush3.xpose.msk.msra.mxu0 %vm52_vm0, %v28_v29  ;;  %vm353_vm13 = vcmask 917312   ;;  %vm360_vm14 = vcmask 982912   ;;  %vm367_vm15 = vcmask 1048512  }
  0x18   :  { %480 = vmatprep.subr.msk.mxu0 %vm52_vm0, %v27_v30 }
  0x19   :  { %78 = vadd.xlane.f32.xlu0 %v77_v38 }
  0x1a   :  { %87 = vadd.xlane.f32.xlu1 %v86_v40  ;;  %v334_v40 = vadd.s32 4294967208, %v724_v56 }
  0x1b   :  { %481 = vmatpush3.xpose.msk.msra.mxu0 %vm52_vm0, %v27_v30  ;;  %v320_v30 = vadd.s32 4294967224, %v724_v56 }
  0x1c   :  { %482 = vmatprep.subr.msk.mxu0 %vm52_vm0, %v26_v31 }
  0x1d   :  { %84 = vadd.xlane.f32.xlu0 %v83_v42  ;;  %v323_v36 = vsub.s32 %v320_v30, %v726_v57 }
  0x1e   :  { %93 = vadd.xlane.f32.xlu1 %v92_v44 }
  0x1f   :  { %483 = vmatpush3.xpose.msk.msra.mxu0 %vm52_vm0, %v26_v31  ;;  %v316_v31 = vsub.s32 %v313_v25, %v726_v57 }
  0x20   :  { %484 = vmatprep.subr.msk.mxu0 %vm52_vm0, %v25_v23 }
  0x21   :  { %90 = vadd.xlane.f32.xlu0 %v89_v46  ;;  %v337_v46 = vsub.s32 %v334_v40, %v726_v57 }
  0x22   :  { %99 = vadd.xlane.f32.xlu1 %v98_v48 }
  0x23   :  { %485 = vmatpush3.xpose.msk.msra.mxu0 %vm52_vm0, %v25_v23 }
  0x24   :  { %486 = vmatprep.subr.msk.mxu0 %vm52_vm0, %v24_v24 }
  0x25   :  { %96 = vadd.xlane.f32.xlu0 %v95_v49 }
  0x27   :  { %487 = vmatpush3.xpose.msk.msra.mxu0 %vm52_vm0, %v24_v24 }
  0x28   :  { %488 = vmatprep.subr.msk.mxu0 %vm52_vm0, %v621_v15 }
  0x2b   :  { %489 = vmatpush3.xpose.msk.msra.mxu0 %vm52_vm0, %v621_v15  ;;  %v299_v15 = vadd.s32 4294967248, %v724_v56 }
  0x2c   :  { %490 = vmatprep.subr.msk.mxu0 %vm52_vm0, %v627_v17 }
  0x2d   :  { %v302_v21 = vsub.s32 %v299_v15, %v726_v57 }
  0x2f   :  { %491 = vmatpush3.xpose.msk.msra.mxu0 %vm52_vm0, %v627_v17 }
  0x30   :  { %492 = vmatprep.subr.msk.mxu0 %vm52_vm0, %v582_v4 }
  0x33   :  { %493 = vmatpush3.xpose.msk.msra.mxu0 %vm52_vm0, %v582_v4  ;;  %239 = vperm.xlu1 %506, %v231_v50   ;;  %v348_v50 = vadd.s32 4294967192, %v724_v56 }
  0x34   :  { %494 = vmatprep.subr.msk.mxu0 %vm52_vm0, %v587_v5 }
  0x35   :  { %v351_v58 = vsub.s32 %v348_v50, %v726_v57 }
  0x37   :  { %495 = vmatpush3.xpose.msk.msra.mxu0 %vm52_vm0, %v587_v5  ;;  %400 = vperm.xlu1 %506, %v396_v51   ;;  %v285_v5 = vadd.s32 4294967264, %v724_v56  ;;  %v344_v51 = vsub.s32 %v341_v45, %v726_v57 }
  0x38   :  { %496 = vmatprep.subr.msk.mxu0 %vm52_vm0, %v592_v6 }
  0x39   :  { %v288_v11 = vsub.s32 %v285_v5, %v726_v57 }
  0x3b   :  { %497 = vmatpush3.xpose.msk.msra.mxu0 %vm52_vm0, %v592_v6  ;;  %234 = vperm.xlu0 %505, %v230_v52   ;;  %v281_v6 = vsub.s32 %v278_v0, %v726_v57 }
  0x3c   :  { %498 = vmatprep.subr.msk.mxu0 %vm52_vm0, %v597_v7  ;;  %405 = vperm.xlu1 %506, %v397_v53  }
  0x3f   :  { %499 = vmatpush3.xpose.msk.msra.mxu0 %vm52_vm0, %v597_v7 }
  0x42   :  { %501 = vmatmul.mubr.msk.f32.vlgmr.msra.gmra.mxu0 %vm52_vm0, %v35_v54 }
  0x8f   :  { %v61_v63 = vpop.xlane.xlu1 %60 }
  0x90   :  { %v275_v7 = vrot.slane %v61_v63, %v274_v1  ;;  %v358_v63 = vsub.s32 %v355_v55, %v726_v57 }
  0x92   :  { %v55_v59 = vpop.xlane.xlu0 %54 }
  0x93   :  { %v263_v3 = vrot.slane %v55_v59, %v262_v61  ;;  %v64_v8 = vpop.xlane.xlu1 %63 }
  0x94   :  { %v282_v12 = vrot.slane %v64_v8, %v281_v6 }
  0x96   :  { %v58_v2 = vpop.xlane.xlu0 %57 }
  0x97   :  { %v268_v4 = vrot.slane %v58_v2, %v267_v62  ;;  %v70_v17 = vpop.xlane.xlu1 %69  ;;  %v362_v62 = vadd.s32 4294967176, %v724_v56 }
  0x98   :  { %v296_v22 = vrot.slane %v70_v17, %v295_v16 }
  0x99   :  { %v270_v9 = vsel %vm269_vm1, %v268_v4, %v263_v3  ;;  %v365_v3 = vsub.s32 %v362_v62, %v726_v57 }
  0x9a   :  { %v67_v13 = vpop.xlane.xlu0 %66  ;;  %v277_v14 = vsel %vm276_vm2, %v275_v7, %v270_v9 }
  0x9b   :  { %v289_v18 = vrot.slane %v67_v13, %v288_v11  ;;  %v284_v19 = vsel %vm283_vm3, %v282_v12, %v277_v14  ;;  %v76_v27 = vpop.xlane.xlu1 %75 }
  0x9c   :  { %v310_v32 = vrot.slane %v76_v27, %v309_v26 }
  0x9d   :  { %v291_v24 = vsel %vm290_vm4, %v289_v18, %v284_v19 }
  0x9e   :  { %v73_v23 = vpop.xlane.xlu0 %72  ;;  %v298_v29 = vsel %vm297_vm5, %v296_v22, %v291_v24 }
  0x9f   :  { %v303_v28 = vrot.slane %v73_v23, %v302_v21  ;;  %v82_v37 = vpop.xlane.xlu1 %81 }
  0xa0   :  { %v324_v42 = vrot.slane %v82_v37, %v323_v36 }
  0xa1   :  { %v305_v34 = vsel %vm304_vm6, %v303_v28, %v298_v29 }
  0xa2   :  { %v79_v33 = vpop.xlane.xlu0 %78  ;;  %v312_v39 = vsel %vm311_vm7, %v310_v32, %v305_v34 }
  0xa3   :  { %v317_v38 = vrot.slane %v79_v33, %v316_v31  ;;  %v88_v47 = vpop.xlane.xlu1 %87 }
  0xa4   :  { %v338_v52 = vrot.slane %v88_v47, %v337_v46 }
  0xa5   :  { %v319_v44 = vsel %vm318_vm8, %v317_v38, %v312_v39 }
  0xa6   :  { %v85_v43 = vpop.xlane.xlu0 %84  ;;  %v326_v49 = vsel %vm325_vm9, %v324_v42, %v319_v44 }
  0xa7   :  { %v331_v48 = vrot.slane %v85_v43, %v330_v41  ;;  %v94_v59 = vpop.xlane.xlu1 %93 }
  0xa8   :  { %v352_v0 = vrot.slane %v94_v59, %v351_v58 }
  0xa9   :  { %v333_v54 = vsel %vm332_vm10, %v331_v48, %v326_v49 }
  0xaa   :  { %v91_v53 = vpop.xlane.xlu0 %90  ;;  %v340_v61 = vsel %vm339_vm11, %v338_v52, %v333_v54 }
  0xab   :  { %v345_v60 = vrot.slane %v91_v53, %v344_v51  ;;  %v100_v4 = vpop.xlane.xlu1 %99 }
  0xac   :  { %v366_v7 = vrot.slane %v100_v4, %v365_v3 }
  0xad   :  { %v347_v2 = vsel %vm346_vm12, %v345_v60, %v340_v61 }
  0xae   :  { %v97_v1 = vpop.xlane.xlu0 %96  ;;  %v354_v6 = vsel %vm353_vm13, %v352_v0, %v347_v2 }
  0xaf   :  { %v359_v5 = vrot.slane %v97_v1, %v358_v63  ;;  %v240_v9 = vpop.permute.xlu1 %239 }
  0xb1   :  { %v361_v8 = vsel %vm360_vm14, %v359_v5, %v354_v6 }
  0xb2   :  { %v368_v10 = vsel %vm367_vm15, %v366_v7, %v361_v8 }
  0xb3   :  { %v383_v56 = vadd.f32 %v368_v10, %v240_v9  ;;  %v401_v24 = vpop.permute.xlu1 %400 }
  0xb6   :  { %v235_v11 = vpop.permute.xlu0 %234 }
  0xb7   :  { %v382_v15 = vadd.f32 %v368_v10, %v235_v11  ;;  %v406_v27 = vpop.permute.xlu1 %405 }
 0x102   :  { %v502_v12 = vpop.f32.mrf.mxu0 }
 0x103   :  { %v385_v13 = vmul.f32 2.0, %v502_v12 }
 0x104   :  { %v221_v14 = vpop.f32.mrf.mxu0 }
 0x105   :  { %v387_v16 = vsub.f32 %v383_v56, %v385_v13  ;;  %v384_v17 = vmul.f32 2.0, %v221_v14 }
 0x107   :  { %v389_v18 = vmax.f32 %v387_v16, 0.0  ;;  %v386_v19 = vsub.f32 %v382_v15, %v384_v17 }
 0x109   :  { %v391_v57 = vmul.f32 -0.22222222, %v389_v18  ;;  %v388_v20 = vmax.f32 %v386_v19, 0.0 }
 0x10b   :  { %v394_v21 = vmul.f32 1.442695, %v391_v57  ;;  %v390_v22 = vmul.f32 -0.22222222, %v388_v20 }
 0x10d   :  { %507 = vpow2.f32 %v394_v21  ;;  %v392_v23 = vmul.f32 1.442695, %v390_v22 }
 0x10f   :  { %509 = vpow2.f32 %v392_v23 }
 0x11a   :  { %v508_v25 = vpop.eup %507 }
 0x11b   :  { %v409_v28 = vmul.f32 %v508_v25, %v406_v27 }
 0x11c   :  { %v510_v26 = vpop.eup %509 }
 0x11d   :  { %v408_v29 = vmul.f32 %v510_v26, %v401_v24 }
 0x11f   :  { %v410_v30 = vadd.f32 %v409_v28, %v408_v29 }
 0x121   :  { %v411_v31 = vrot.slane %v410_v30, 4 }
 0x123   :  { %v412_v32 = vadd.f32 %v411_v31, %v410_v30 }
 0x125   :  { %v413_v33 = vrot.slane %v412_v32, 2 }
 0x127   :  { %v414_v34 = vadd.f32 %v413_v33, %v412_v32 }
 0x129   :  { %v415_v35 = vrot.slane %v414_v34, 1 }
 0x12b   :  { %v416_v36 = vadd.f32 %v415_v35, %v414_v34 }
 0x12d   :  { %417 = vst [vmem:[#allocation2] sm:$0x1] %v416_v36 }
 0x12e   :  { %522 = shalt.err (!%p519_p4)
}
 0x12f   :  { %427 = dma.vmem_to_hbm [thread:$0]  %s425_s2, 16, %s767_s4, [#allocation3]  }
 0x130   :  { %531 = dma.done.wait [#allocation3], 16  }
 0x131   :  { %532 = vsyncadd [#allocation3], 4294967280 }
 0x132   :  { %431 = vsyncpa [#allocation3], 1 }

</bundles_post_ra>
